<compile_context>
chip_gen: v6e
topology: v6e:2x2x1
jax: 0.10.0
libtpu: 0.0.40
codegen_flags: <defaults>
</compile_context>

<pallas_src>
import functools

import numpy as np
import jax
import jax.numpy as jnp
from jax import lax
from jax.experimental import pallas as pl
from jax.experimental.pallas import tpu as pltpu


def dimension_split(d, m):
    reminder = d % m
    quotient = d // m
    dims_width = [quotient + 1 if i < reminder else quotient for i in range(m)]
    ds = np.cumsum(dims_width)
    ds = np.insert(ds, 0, 0)
    return ds


def _round_up(a, b):
    return (a + b - 1) // b * b


def _pick_tile(padded, pref, align):
    """Largest multiple of `align` <= pref dividing `padded` (padded % align == 0)."""
    if padded <= pref:
        return padded
    t = (pref // align) * align
    while t > align and padded % t != 0:
        t -= align
    return max(t, align)


def _pq_dense_kernel(x_ref, w_ref, b_ref, o_ref, acc_ref):
    # x_ref: [TM, TK]  activations tile
    # w_ref: [TK, TN]  pre-transposed fused weight tile
    # b_ref: [1,  TN]  summed gathered bias tile
    # o_ref: [TM, TN]  output tile
    # acc_ref: [TM, TN] f32 accumulator (persists across the K grid axis)
    k = pl.program_id(2)

    @pl.when(k == 0)
    def _():
        acc_ref[...] = jnp.zeros_like(acc_ref)

    acc_ref[...] += jnp.dot(x_ref[...], w_ref[...],
                            preferred_element_type=jnp.float32)

    @pl.when(k == pl.num_programs(2) - 1)
    def _():
        o_ref[...] = (acc_ref[...] + b_ref[...]).astype(o_ref.dtype)


def prepare_pq_dense_params(ws, bs, idxs, param_dtype=jnp.float32):
    """One-time (cacheable) parameter preparation.

    ws[i]:   [ks, sub_dim_i]   bs[i]: [ks]   idxs[i]: [d_output] int32
    Returns (wp, bp, d_input, d_output) with
      wp: [Kp, Np] pre-transposed fused weight (zero padded, lane-dense)
      bp: [1,  Np] summed gathered bias (f32, zero padded)
    """
    m = len(ws)
    d_output = int(idxs[0].shape[0])
    d_input = int(sum(int(w.shape[1]) for w in ws))

    # Gather selected rows of each group's weight, fuse along the input dim.
    wg = jnp.concatenate([ws[i][idxs[i], :] for i in range(m)], axis=1)  # [d_output, d_input]
    bg = bs[0][idxs[0]]
    for i in range(1, m):
        bg = bg + bs[i][idxs[i]]                                          # [d_output]

    Kp = _round_up(d_input, 128)
    Np = _round_up(d_output, 128)

    wp = jnp.zeros((Kp, Np), param_dtype).at[:d_input, :d_output].set(
        wg.T.astype(param_dtype))
    bp = jnp.zeros((1, Np), jnp.float32).at[0, :d_output].set(
        bg.astype(jnp.float32))
    return wp, bp, d_input, d_output


def pq_dense_forward(x, wp, bp, *, d_input, d_output):
    """PQDenseLayer forward using cached (wp, bp) from prepare_pq_dense_params."""
    B = x.shape[0]
    Kp, Np = wp.shape

    # Batch tile capped at 128 rows: at most TM-1 wasted padded rows.
    TM = min(128, _round_up(B, 8))
    Bp = _round_up(B, TM)
    TN = _pick_tile(Np, 512, 128)
    TK = _pick_tile(Kp, 512, 128)

    if (Bp, Kp) != (B, d_input):
        xp = jnp.zeros((Bp, Kp), x.dtype).at[:B, :d_input].set(x)
    else:
        xp = x

    grid = (Bp // TM, Np // TN, Kp // TK)

    # Advisory cost: unpadded useful work, real element sizes.
    flops = 2 * B * d_input * d_output
    bytes_accessed = int(
        B * d_input * x.dtype.itemsize
        + wp.size * wp.dtype.itemsize
        + bp.size * bp.dtype.itemsize
        + B * d_output * x.dtype.itemsize)

    out = pl.pallas_call(
        _pq_dense_kernel,
        out_shape=jax.ShapeDtypeStruct((Bp, Np), x.dtype),
        grid=grid,
        in_specs=[
            pl.BlockSpec((TM, TK), lambda i, j, k: (i, k)),   # activations
            pl.BlockSpec((TK, TN), lambda i, j, k: (k, j)),   # fused weight
            pl.BlockSpec((1, TN), lambda i, j, k: (0, j)),    # fused bias
        ],
        out_specs=pl.BlockSpec((TM, TN), lambda i, j, k: (i, j)),
        scratch_shapes=[pltpu.VMEM((TM, TN), jnp.float32)],
        compiler_params=pltpu.CompilerParams(
            dimension_semantics=("parallel", "parallel", "arbitrary")),
        cost_estimate=pl.CostEstimate(
            flops=flops, transcendentals=0, bytes_accessed=bytes_accessed),
    )(xp, wp, bp)

    return out[:B, :d_output]


def _make_pq_params(key, d_input, d_output, m, ks):
    ds = dimension_split(d_input, m)
    ws, bs, idxs = [], [], []
    for i in range(m):
        sub = int(ds[i + 1] - ds[i])
        kw, kb, ki, key = jax.random.split(key, 4)
        bound = 1.0 / float(np.sqrt(sub))
        # nn.Linear-like init scale.
        ws.append(jax.random.uniform(kw, (ks, sub), jnp.float32, -bound, bound))
        bs.append(jax.random.uniform(kb, (ks,), jnp.float32, -bound, bound))
        # torch.randint(low=0, high=ks, size=(d_output,)) equivalent.
        idxs.append(jax.random.randint(ki, (d_output,), 0, ks, dtype=jnp.int32))
    return ds, ws, bs, idxs, key


def _reference(x, ds, ws, bs, idxs):
    # Pure-JAX reference: per-group Linear -> index_select(dim=1), stack, sum.
    parts = []
    for i in range(len(ws)):
        xi = x[:, int(ds[i]):int(ds[i + 1])]
        yi = xi @ ws[i].T + bs[i]
        parts.append(yi[:, idxs[i]])
    return jnp.stack(parts, axis=0).sum(axis=0)


if __name__ == "__main__":
    key = jax.random.PRNGKey(0)
    fwd = jax.jit(pq_dense_forward, static_argnames=("d_input", "d_output"))

    # ---- Case 1: small shapes (single-tile grid) ----
    B, d_input, m, ks, d_output = 8, 35, 4, 32, 48
    ds, ws, bs, idxs, key = _make_pq_params(key, d_input, d_output, m, ks)
    kx, key = jax.random.split(key)
    x = jax.random.normal(kx, (B, d_input), dtype=jnp.float32)

    # One-time cached parameter prep (gather / concat / transpose / pad).
    wp, bp, d_in, d_out = prepare_pq_dense_params(ws, bs, idxs)
    wp, bp = jax.block_until_ready((wp, bp))

    out = jax.block_until_ready(fwd(x, wp, bp, d_input=d_in, d_output=d_out))
    ref = _reference(x, ds, ws, bs, idxs)
    assert out.shape == (B, d_output)
    assert jnp.allclose(out, ref, atol=1e-5, rtol=1e-5), "case1 mismatch vs reference"

    # ---- Case 2: larger shapes exercising multi-tile B / N / K grid ----
    B2, d_input2, m2, ks2, d_output2 = 130, 700, 6, 64, 600
    ds2, ws2, bs2, idxs2, key = _make_pq_params(key, d_input2, d_output2, m2, ks2)
    kx2, key = jax.random.split(key)
    x2 = jax.random.normal(kx2, (B2, d_input2), dtype=jnp.float32)

    wp2, bp2, di2, do2 = prepare_pq_dense_params(ws2, bs2, idxs2)
    wp2, bp2 = jax.block_until_ready((wp2, bp2))

    out2 = jax.block_until_ready(fwd(x2, wp2, bp2, d_input=di2, d_output=do2))
    ref2 = _reference(x2, ds2, ws2, bs2, idxs2)
    assert out2.shape == (B2, d_output2)
    assert jnp.allclose(out2, ref2, atol=1e-4, rtol=1e-4), "case2 mismatch vs reference"

    print("KERNEL_OK")
</pallas_src>

<mosaic_0001>
module attributes {stable_mosaic.version = 11 : i64} {
  func.func @_pq_dense_kernel(%arg0: i32, %arg1: i32, %arg2: i32, %arg3: memref<8x128xf32, #tpu.memory_space<vmem>>, %arg4: memref<128x128xf32, #tpu.memory_space<vmem>>, %arg5: memref<1x128xf32, #tpu.memory_space<vmem>>, %arg6: memref<8x128xf32, #tpu.memory_space<vmem>>, %arg7: memref<8x128xf32, #tpu.memory_space<vmem>>) attributes {dimension_semantics = [#tpu.dimension_semantics<parallel>, #tpu.dimension_semantics<parallel>, #tpu.dimension_semantics<arbitrary>], iteration_bounds = array<i64: 1, 1, 1>, scalar_prefetch = 0 : i64, scratch_operands = 1 : i64, tpu.core_type = #tpu.core_type<tc>, window_params = [{transform_indices = @transform_0, window_bounds = array<i64: 8, 128>}, {transform_indices = @transform_1, window_bounds = array<i64: 128, 128>}, {transform_indices = @transform_2, window_bounds = array<i64: 1, 128>}, {transform_indices = @transform_3, window_bounds = array<i64: 8, 128>}]} {
    %c0_i32 = arith.constant 0 : i32
    %0 = arith.cmpi eq, %arg2, %c0_i32 : i32
    %1 = arith.extui %0 : i1 to i32
    %c0_i32_0 = arith.constant 0 : i32
    %2 = arith.cmpi ne, %1, %c0_i32_0 : i32
    scf.if %2 {
      %cst_10 = arith.constant 0.000000e+00 : f32
      %12 = vector.broadcast %cst_10 : f32 to vector<8x128xf32>
      %c0_11 = arith.constant 0 : index
      %c0_12 = arith.constant 0 : index
      %13 = vector.load %arg7[%c0_11, %c0_12] : memref<8x128xf32, #tpu.memory_space<vmem>>, vector<8x128xf32>
      tpu.vector_store %arg7[%c0_11, %c0_12], %12 {strides = array<i32>} : memref<8x128xf32, #tpu.memory_space<vmem>>, vector<8x128xf32>,
    } else {
    }
    %c0 = arith.constant 0 : index
    %c0_1 = arith.constant 0 : index
    %3 = vector.load %arg7[%c0, %c0_1] : memref<8x128xf32, #tpu.memory_space<vmem>>, vector<8x128xf32>
    %c0_2 = arith.constant 0 : index
    %c0_3 = arith.constant 0 : index
    %4 = vector.load %arg3[%c0_2, %c0_3] : memref<8x128xf32, #tpu.memory_space<vmem>>, vector<8x128xf32>
    %c0_4 = arith.constant 0 : index
    %c0_5 = arith.constant 0 : index
    %5 = vector.load %arg4[%c0_4, %c0_5] : memref<128x128xf32, #tpu.memory_space<vmem>>, vector<128x128xf32>
    %cst = arith.constant dense<0.000000e+00> : vector<8x128xf32>
    %6 = tpu.matmul %4, %5, %cst {dimension_numbers = #tpu.dot_dimension_numbers<[1], [0], [0], [1], [0, 0, 1, 1], [], []>} : vector<8x128xf32>, vector<128x128xf32>, vector<8x128xf32> -> vector<8x128xf32>
    %7 = arith.addf %3, %6 : vector<8x128xf32>
    %c0_6 = arith.constant 0 : index
    %c0_7 = arith.constant 0 : index
    %8 = vector.load %arg7[%c0_6, %c0_7] : memref<8x128xf32, #tpu.memory_space<vmem>>, vector<8x128xf32>
    tpu.vector_store %arg7[%c0_6, %c0_7], %7 {strides = array<i32>} : memref<8x128xf32, #tpu.memory_space<vmem>>, vector<8x128xf32>,
    %c0_i32_8 = arith.constant 0 : i32
    %9 = arith.cmpi eq, %arg2, %c0_i32_8 : i32
    %10 = arith.extui %9 : i1 to i32
    %c0_i32_9 = arith.constant 0 : i32
    %11 = arith.cmpi ne, %10, %c0_i32_9 : i32
    scf.if %11 {
      %c0_10 = arith.constant 0 : index
      %c0_11 = arith.constant 0 : index
      %12 = vector.load %arg7[%c0_10, %c0_11] : memref<8x128xf32, #tpu.memory_space<vmem>>, vector<8x128xf32>
      %c0_12 = arith.constant 0 : index
      %c0_13 = arith.constant 0 : index
      %13 = vector.load %arg5[%c0_12, %c0_13] : memref<1x128xf32, #tpu.memory_space<vmem>>, vector<1x128xf32>
      %14 = vector.broadcast %13 : vector<1x128xf32> to vector<8x128xf32>
      %15 = arith.addf %12, %14 : vector<8x128xf32>
      %c0_14 = arith.constant 0 : index
      %c0_15 = arith.constant 0 : index
      %16 = vector.load %arg6[%c0_14, %c0_15] : memref<8x128xf32, #tpu.memory_space<vmem>>, vector<8x128xf32>
      tpu.vector_store %arg6[%c0_14, %c0_15], %15 {strides = array<i32>} : memref<8x128xf32, #tpu.memory_space<vmem>>, vector<8x128xf32>,
    } else {
    }
    return
  }
  func.func @transform_0(%arg0: i32, %arg1: i32, %arg2: i32) -> (i32, i32) {
    %c0_i32 = arith.constant 0 : i32
    return %arg0, %arg2 : i32, i32
  }
  func.func @transform_1(%arg0: i32, %arg1: i32, %arg2: i32) -> (i32, i32) {
    %c0_i32 = arith.constant 0 : i32
    return %arg2, %arg1 : i32, i32
  }
  func.func @transform_2(%arg0: i32, %arg1: i32, %arg2: i32) -> (i32, i32) {
    %c0_i32 = arith.constant 0 : i32
    %c0_i32_0 = arith.constant 0 : i32
    return %c0_i32, %arg1 : i32, i32
  }
  func.func @transform_3(%arg0: i32, %arg1: i32, %arg2: i32) -> (i32, i32) {
    %c0_i32 = arith.constant 0 : i32
    return %arg0, %arg1 : i32, i32
  }
}

</mosaic_0001>

<bundles_post_ra>
// kernel: pq_dense_forward.1
= control target key start
LH: loop header
LB: loop body
LE: loop exit
PB: predicated region body
PF: predicated region fallthrough
CT: control target
= control target key end

     0   :  { %8 = vsyncpa [#allocation4], 0  ;;  %s293_s0 = inlined_call_operand.vmem [shape: f32[8,128], index: 0, kind: input, shape index: {}]   ;;  %s294_s1 = inlined_call_operand.hbm [shape: f32[128,128], index: 1, kind: input, shape index: {}]   ;;  %s295_s2 = inlined_call_operand.vmem [shape: f32[1,128], index: 2, kind: input, shape index: {}]   ;;  %s296_s3 = inlined_call_operand.hbm [shape: f32[8,128], index: 3, kind: output, shape index: {}]  }
   0x1   :  { %9 = vsyncpa [#allocation5], 0  ;;  %s255_s12 = smov [#allocation3]  }
   0x2   :  { %s17_s13 = sshll.u32 %s255_s12, 4  ;;  %s18_s13 = int_to_ptr.vmem [resolvable:$true] %s17_s13 }
   0x3   :  { %s219_s14 = scalar_lea.vmem %s18_s13, 2048  ;;  %p224_p1 = scmp.lt.s32.totalorder %s18_s13, %s18_s13 }
   0x4   :  { %p220_p0 = scmp.ne.s32.totalorder %s18_s13, %s219_s14  ;;  %p225_p2 = scmp.lt.s32.totalorder %s219_s14, %s219_s14 }
   0x6   :  { %p226_p3 = por %p225_p2, %p224_p1 }
   0x8   :  { %p227_p4 = pnand %p226_p3, %p220_p0 }
   0xa   :  { %230 = shalt.err (!%p227_p4)
}
   0xb   :  { %s256_s15 = smov 128   ;;  %s257_s16 = smov 8  }
   0xc   :  { %23 = dma.hbm_to_vmem [thread:$0]  %s294_s1, 2048, %s18_s13, [#allocation4], %s256_s15, %s256_s15, %s257_s16  }
   0xd   :  { %251 = dma.done.wait [#allocation4], 2048  }
   0xe   :  { %252 = vsyncadd [#allocation4], 4294965248  ;;  %v258_v0 = vmov 0.0   ;;  %vm259_vm0 = vmmov 0   ;;  %v51_v1 = vld [vmem:[#allocation3 + $0x78] sm:$0xff]  ;;  %v50_v2 = vld [vmem:[#allocation3 + $0x70] sm:$0xff] }
   0xf   :  { %170 = vmatprep.subr.mxu0 %v258_v0  ;;  %202 = vmatprep.mubr.msk.f32.mxu0 %vm259_vm0, %v258_v0  ;;  %v49_v3 = vld [vmem:[#allocation3 + $0x68] sm:$0xff]  ;;  %v48_v4 = vld [vmem:[#allocation3 + $0x60] sm:$0xff]  ;;  %v47_v5 = vld [vmem:[#allocation3 + $0x58] sm:$0xff]  ;;  %s260_s22 = smov [#allocation6]  }
  0x10   :  { %171 = vmatpush3.msra.mxu0 %v51_v1  ;;  %v46_v6 = vld [vmem:[#allocation3 + $0x50] sm:$0xff]  ;;  %v45_v7 = vld [vmem:[#allocation3 + $0x48] sm:$0xff]  ;;  %v44_v8 = vld [vmem:[#allocation3 + $0x40] sm:$0xff]  ;;  %s143_s23 = sshll.u32 %s260_s22, 4  ;;  %s144_s23 = int_to_ptr.vmem [resolvable:$true] %s143_s23 }
  0x11   :  { %172 = vmatprep.subr.mxu0 %v258_v0  ;;  %v43_v9 = vld [vmem:[#allocation3 + $0x38] sm:$0xff]  ;;  %v42_v10 = vld [vmem:[#allocation3 + $0x30] sm:$0xff]  ;;  %v41_v11 = vld [vmem:[#allocation3 + $0x28] sm:$0xff]  ;;  %s231_s24 = scalar_lea.vmem %s144_s23, 128  ;;  %p236_p6 = scmp.lt.s32.totalorder %s144_s23, %s144_s23 }
  0x12   :  { %173 = vmatpush3.msra.mxu0 %v50_v2  ;;  %v40_v12 = vld [vmem:[#allocation3 + $0x20] sm:$0xff]  ;;  %v39_v13 = vld [vmem:[#allocation3 + $0x18] sm:$0xff]  ;;  %v38_v14 = vld [vmem:[#allocation3 + $0x10] sm:$0xff]  ;;  %p232_p5 = scmp.ne.s32.totalorder %s144_s23, %s231_s24  ;;  %p237_p7 = scmp.lt.s32.totalorder %s231_s24, %s231_s24 }
  0x13   :  { %174 = vmatprep.subr.mxu0 %v258_v0  ;;  %v37_v15 = vld [vmem:[#allocation3 + $0x8] sm:$0xff]  ;;  %v36_v16 = vld [vmem:[#allocation3] sm:$0xff] }
  0x14   :  { %175 = vmatpush3.msra.mxu0 %v49_v3  ;;  %v35_v17 = vld [vmem:[%s293_s0] sm:$0xff]  ;;  %p238_p8 = por %p237_p7, %p236_p6 }
  0x15   :  { %176 = vmatprep.subr.mxu0 %v258_v0  ;;  %v152_v18 = vld [vmem:[%s295_s2] ss:$0 sm:$0xff] }
  0x16   :  { %177 = vmatpush3.msra.mxu0 %v48_v4  ;;  %p239_p9 = pnand %p238_p8, %p232_p5 }
  0x17   :  { %178 = vmatprep.subr.mxu0 %v258_v0 }
  0x18   :  { %179 = vmatpush3.msra.mxu0 %v47_v5 }
  0x19   :  { %180 = vmatprep.subr.mxu0 %v258_v0 }
  0x1a   :  { %181 = vmatpush3.msra.mxu0 %v46_v6 }
  0x1b   :  { %182 = vmatprep.subr.mxu0 %v258_v0 }
  0x1c   :  { %183 = vmatpush3.msra.mxu0 %v45_v7 }
  0x1d   :  { %184 = vmatprep.subr.mxu0 %v258_v0 }
  0x1e   :  { %185 = vmatpush3.msra.mxu0 %v44_v8 }
  0x1f   :  { %186 = vmatprep.subr.mxu0 %v258_v0 }
  0x20   :  { %187 = vmatpush3.msra.mxu0 %v43_v9 }
  0x21   :  { %188 = vmatprep.subr.mxu0 %v258_v0 }
  0x22   :  { %189 = vmatpush3.msra.mxu0 %v42_v10 }
  0x23   :  { %190 = vmatprep.subr.mxu0 %v258_v0 }
  0x24   :  { %191 = vmatpush3.msra.mxu0 %v41_v11 }
  0x25   :  { %192 = vmatprep.subr.mxu0 %v258_v0 }
  0x26   :  { %193 = vmatpush3.msra.mxu0 %v40_v12 }
  0x27   :  { %194 = vmatprep.subr.mxu0 %v258_v0 }
  0x28   :  { %195 = vmatpush3.msra.mxu0 %v39_v13 }
  0x29   :  { %196 = vmatprep.subr.mxu0 %v258_v0 }
  0x2a   :  { %197 = vmatpush3.msra.mxu0 %v38_v14 }
  0x2b   :  { %198 = vmatprep.subr.mxu0 %v258_v0 }
  0x2c   :  { %199 = vmatpush3.msra.mxu0 %v37_v15 }
  0x2d   :  { %200 = vmatprep.subr.mxu0 %v258_v0 }
  0x2e   :  { %201 = vmatpush3.msra.mxu0 %v36_v16 }
  0x2f   :  { %203 = vmatmul.mubr.f32.vlgmr.msra.gmra.mxu0 %v35_v17 }
  0xef   :  { %v118_v19 = vpop.f32.mrf.mxu0 }
  0xf0   :  { %v135_v20 = vadd.f32 %v152_v18, %v118_v19 }
  0xf1   :  { %v204_v21 = vpop.f32.mrf.mxu0 }
  0xf2   :  { %136 = vst [vmem:[#allocation6] sm:$0xff] %v135_v20 }
  0xf3   :  { %242 = shalt.err (!%p239_p9)
}
  0xf4   :  { %146 = dma.vmem_to_hbm [thread:$0]  %s144_s23, 128, %s296_s3, [#allocation5]  }
  0xf5   :  { %253 = dma.done.wait [#allocation5], 128  }
  0xf6   :  { %254 = vsyncadd [#allocation5], 4294967168 }
  0xf7   :  { %150 = vsyncpa [#allocation4], 1 }
  0xf8   :  { %151 = vsyncpa [#allocation5], 1 }

</bundles_post_ra>
